<compile_context>
chip_gen: v7x
topology: tpu7x:2x2x1
jax: 0.10.0
libtpu: 0.0.40
codegen_flags: <defaults>
</compile_context>

<pallas_src>
import functools
import math

import jax
import jax.numpy as jnp
import numpy as np
from jax import lax
from jax.experimental import pallas as pl
from jax.experimental.pallas import tpu as pltpu


def _round_up(x, m):
    return ((x + m - 1) // m) * m


def label_smoothing_kernel(x_ref, tgt_ref, out_ref, acc_ref, m_ref, l_ref, *,
                           confidence, eps, const, vocab_block, vocab_size,
                           mask_vocab, input_is_logits):
    """Streams (TB, TV) tiles of log-probs (or logits) and accumulates per row.

    x_ref:   (TB, TV) native-dtype tile (vocab on lanes), upcast to f32 in-kernel
    tgt_ref: (TB, 1)  i32 target token id per row
    out_ref: (TB, 1)  f32 per-row loss, written only on the last vocab step
    acc_ref / m_ref / l_ref: (TB, 1) f32 VMEM scratch (weighted sum / online LSE)
    """
    j = pl.program_id(1)  # vocab-chunk index (reduction axis, last in grid)

    @pl.when(j == 0)
    def _init():
        acc_ref[...] = jnp.zeros_like(acc_ref)
        if input_is_logits:
            m_ref[...] = jnp.full(m_ref.shape, -jnp.inf, dtype=jnp.float32)
            l_ref[...] = jnp.zeros_like(l_ref)

    x = x_ref[...].astype(jnp.float32)                 # per-tile upcast (free for f32)
    tgt = tgt_ref[...]                                 # (TB, 1) i32

    # Chunk-relative compare: no full-tile absolute-index add.
    lane = lax.broadcasted_iota(jnp.int32, x.shape, 1)
    rel = tgt - j * vocab_block                        # (TB, 1)
    hit = lane == rel

    # Fused weighted reduction: w = confidence at target, eps elsewhere.
    w = jnp.where(hit, confidence, eps)
    wx = w * x
    if mask_vocab:
        # Ragged edge tile: lanes beyond the true vocab hold garbage -> select 0.
        valid = lane < (vocab_size - j * vocab_block)
        wx = jnp.where(valid, wx, 0.0)
    acc_ref[...] += jnp.sum(wx, axis=1, keepdims=True)

    if input_is_logits:
        # Fused log_softmax: online logsumexp over raw logits.
        xm = jnp.where(lane < (vocab_size - j * vocab_block), x, -jnp.inf) \
            if mask_vocab else x
        m_new = jnp.maximum(m_ref[...], jnp.max(xm, axis=1, keepdims=True))
        l_ref[...] = (l_ref[...] * jnp.exp(m_ref[...] - m_new)
                      + jnp.sum(jnp.exp(xm - m_new), axis=1, keepdims=True))
        m_ref[...] = m_new

    @pl.when(j == pl.num_programs(1) - 1)
    def _finalize():
        res = const - acc_ref[...]
        if input_is_logits:
            # sum_v true_dist[v] == 1 exactly, so logsumexp enters with weight 1.
            res = res + m_ref[...] + jnp.log(l_ref[...])
        out_ref[...] = res


def label_smoothing_forward(x, target, mask, *, smoothing=0.0, reduction="mean",
                            input_is_logits=False, row_block=256, vocab_block=8192):
    """Pallas TPU implementation of LabelSmoothing.forward.

    x:      (N, L, V) log-probabilities (module semantics), or raw logits when
            input_is_logits=True (fused log_softmax path)
    target: (N, >=L)  int token ids
    mask:   (N, >=L)  float mask
    """
    N, L, V = x.shape
    target = target[:, :L]
    mask = mask[:, :L]

    B = N * L
    xf = x.reshape(B, V)                           # free reshape; native dtype, no pad
    t = target.reshape(B, 1).astype(jnp.int32)
    m = mask.reshape(B).astype(jnp.float32)

    confidence = 1.0 - float(smoothing)
    eps = float(smoothing) / (V - 1)

    # Data-independent sum_v td*log(td), with xlogy(0,0) := 0.
    const = 0.0
    if eps > 0.0:
        const += (V - 1) * eps * math.log(eps)
    if confidence > 0.0:
        const += confidence * math.log(confidence)

    # Rows on sublanes (multiple of 16 for bf16 packing), vocab on lanes (x128).
    TB = min(row_block, _round_up(B, 16))
    # v7x megacore: keep the 'parallel' row axis at >= 2 blocks when possible.
    if B > 16 and pl.cdiv(B, TB) < 2:
        TB = min(TB, _round_up(pl.cdiv(B, 2), 16))
    TV = min(vocab_block, _round_up(V, 128))
    # Keep two double-buffered x tiles (+ small blocks/scratch) under a 32 MiB
    # scoped-VMEM limit: safe on v5e (16 MiB default raised), v6e, and v7x (64 MiB
    # physical per TC).
    itemsize = jnp.dtype(xf.dtype).itemsize
    while TV > 128 and 2 * TB * TV * itemsize > 24 * 1024 * 1024:
        TV = max(128, _round_up(TV // 2, 128))

    grid = (pl.cdiv(B, TB), pl.cdiv(V, TV))        # rows parallel, vocab reduction last

    kernel = functools.partial(
        label_smoothing_kernel,
        confidence=confidence, eps=eps, const=const,
        vocab_block=TV, vocab_size=V,
        mask_vocab=(V % TV) != 0,
        input_is_logits=input_is_logits)

    per_row = pl.pallas_call(
        kernel,
        out_shape=jax.ShapeDtypeStruct((B, 1), jnp.float32),
        grid_spec=pltpu.PrefetchScalarGridSpec(
            num_scalar_prefetch=0,
            grid=grid,
            in_specs=[
                pl.BlockSpec((TB, TV), lambda i, j: (i, j)),   # logp / logits tile
                pl.BlockSpec((TB, 1), lambda i, j: (i, 0)),    # targets per row
            ],
            out_specs=pl.BlockSpec((TB, 1), lambda i, j: (i, 0)),
            scratch_shapes=[pltpu.VMEM((TB, 1), jnp.float32)] * 3,
        ),
        compiler_params=pltpu.CompilerParams(
            dimension_semantics=("parallel", "arbitrary"),
            vmem_limit_bytes=32 * 1024 * 1024),
    )(xf, t)

    out = per_row[:, 0] * m                        # masked per-token loss, shape (B,)

    # Tiny O(N*L) tail math kept outside the kernel (per perf review).
    if reduction == "none":
        return out.reshape(N, L).sum(1) / m.reshape(N, L).sum(1)
    if reduction == "mean":
        return jnp.sum(out) / jnp.sum(m)
    return out


def reference_label_smoothing(logp, target, mask, smoothing, reduction="mean"):
    """Pure-JAX replica of the PyTorch forward for verification."""
    N, L, V = logp.shape
    x = logp.reshape(-1, V).astype(jnp.float32)
    t = target[:, :L].reshape(-1)
    m = mask[:, :L].reshape(-1).astype(jnp.float32)
    confidence = 1.0 - smoothing
    true_dist = jnp.full((x.shape[0], V), smoothing / (V - 1), jnp.float32)
    true_dist = true_dist.at[jnp.arange(x.shape[0]), t].set(confidence)
    log_td = jnp.log(jnp.where(true_dist > 0, true_dist, 1.0))
    kl = jnp.where(true_dist > 0, true_dist * (log_td - x), 0.0)  # KLDivLoss
    out = kl.sum(1) * m
    if reduction == "none":
        return out.reshape(N, L).sum(1) / m.reshape(N, L).sum(1)
    return jnp.sum(out) / jnp.sum(m)


if __name__ == "__main__":
    # Deliberately non-multiples of (8, 128) so the ragged-edge masking is exercised.
    N, L, V = 4, 17, 500
    SMOOTHING = 0.1

    key = jax.random.PRNGKey(0)
    k_logits, k_tgt, k_len = jax.random.split(key, 3)

    logits = jax.random.normal(k_logits, (N, L, V), dtype=jnp.float32)
    logp = jax.nn.log_softmax(logits, axis=-1)
    target = jax.random.randint(k_tgt, (N, L), 0, V, dtype=jnp.int32)
    lengths = jax.random.randint(k_len, (N,), 3, L + 1, dtype=jnp.int32)
    mask = (jnp.arange(L)[None, :] < lengths[:, None]).astype(jnp.float32)

    # 1) General path: smoothing > 0, mean reduction, f32 log-probs, ragged B and V.
    loss = jax.block_until_ready(
        label_smoothing_forward(logp, target, mask, smoothing=SMOOTHING))
    ref = reference_label_smoothing(logp, target, mask, SMOOTHING, "mean")
    assert np.allclose(np.asarray(loss), np.asarray(ref), rtol=1e-4, atol=1e-5), (loss, ref)

    # 2) Multi-chunk vocab reduction (small tiles force several grid steps + ragged tail).
    loss_mc = jax.block_until_ready(
        label_smoothing_forward(logp, target, mask, smoothing=SMOOTHING,
                                row_block=32, vocab_block=256))
    assert np.allclose(np.asarray(loss_mc), np.asarray(ref), rtol=1e-4, atol=1e-5), (loss_mc, ref)

    # 3) smoothing = 0 (pure masked NLL) and reduction='none'.
    loss0 = jax.block_until_ready(
        label_smoothing_forward(logp, target, mask, smoothing=0.0))
    ref0 = reference_label_smoothing(logp, target, mask, 0.0, "mean")
    assert np.allclose(np.asarray(loss0), np.asarray(ref0), rtol=1e-4, atol=1e-5), (loss0, ref0)

    loss_n = jax.block_until_ready(
        label_smoothing_forward(logp, target, mask, smoothing=SMOOTHING,
                                reduction="none"))
    ref_n = reference_label_smoothing(logp, target, mask, SMOOTHING, "none")
    assert np.allclose(np.asarray(loss_n), np.asarray(ref_n), rtol=1e-4, atol=1e-4), (loss_n, ref_n)

    # 4) Native bf16 log-probs streamed directly (no wrapper-side f32 cast/copy).
    logp_bf16 = logp.astype(jnp.bfloat16)
    loss_bf = jax.block_until_ready(
        label_smoothing_forward(logp_bf16, target, mask, smoothing=SMOOTHING))
    ref_bf = reference_label_smoothing(logp_bf16.astype(jnp.float32), target, mask,
                                       SMOOTHING, "mean")
    assert np.allclose(np.asarray(loss_bf), np.asarray(ref_bf), rtol=2e-3, atol=2e-3), (loss_bf, ref_bf)

    # 5) Fused log_softmax path: raw logits in, single streamed pass over HBM.
    loss_fused = jax.block_until_ready(
        label_smoothing_forward(logits, target, mask, smoothing=SMOOTHING,
                                input_is_logits=True))
    assert np.allclose(np.asarray(loss_fused), np.asarray(ref), rtol=1e-3, atol=1e-5), (loss_fused, ref)

    print("KERNEL_OK")
</pallas_src>

<mosaic_0001>
module attributes {stable_mosaic.version = 11 : i64} {
  func.func @label_smoothing_kernel(%arg0: i32, %arg1: i32, %arg2: memref<48x512xf32, #tpu.memory_space<vmem>>, %arg3: memref<48x1xi32, #tpu.memory_space<vmem>>, %arg4: memref<48x1xf32, #tpu.memory_space<vmem>>, %arg5: memref<48x1xf32, #tpu.memory_space<vmem>>, %arg6: memref<48x1xf32, #tpu.memory_space<vmem>>, %arg7: memref<48x1xf32, #tpu.memory_space<vmem>>) attributes {dimension_semantics = [#tpu.dimension_semantics<parallel>, #tpu.dimension_semantics<arbitrary>], iteration_bounds = array<i64: 2, 1>, scalar_prefetch = 0 : i64, scratch_operands = 3 : i64, tpu.core_type = #tpu.core_type<tc>, window_params = [{transform_indices = @transform_0, window_bounds = array<i64: 48, 512>}, {transform_indices = @transform_1, window_bounds = array<i64: 48, 1>}, {transform_indices = @transform_2, window_bounds = array<i64: 48, 1>}]} {
    %c0_i32 = arith.constant 0 : i32
    %0 = arith.cmpi eq, %arg1, %c0_i32 : i32
    %1 = arith.extui %0 : i1 to i32
    %c0_i32_0 = arith.constant 0 : i32
    %2 = arith.cmpi ne, %1, %c0_i32_0 : i32
    scf.if %2 {
      %cst_14 = arith.constant 0.000000e+00 : f32
      %29 = vector.broadcast %cst_14 : f32 to vector<48x1xf32>
      %c0_15 = arith.constant 0 : index
      %c0_16 = arith.constant 0 : index
      %30 = vector.load %arg5[%c0_15, %c0_16] : memref<48x1xf32, #tpu.memory_space<vmem>>, vector<48x1xf32>
      tpu.vector_store %arg5[%c0_15, %c0_16], %29 {strides = array<i32>} : memref<48x1xf32, #tpu.memory_space<vmem>>, vector<48x1xf32>,
    } else {
    }
    %c0 = arith.constant 0 : index
    %c0_1 = arith.constant 0 : index
    %3 = vector.load %arg2[%c0, %c0_1] : memref<48x512xf32, #tpu.memory_space<vmem>>, vector<48x512xf32>
    %c0_2 = arith.constant 0 : index
    %c0_3 = arith.constant 0 : index
    %4 = vector.load %arg3[%c0_2, %c0_3] : memref<48x1xi32, #tpu.memory_space<vmem>>, vector<48x1xi32>
    %5 = tpu.iota {dimensions = array<i32: 1>} : vector<48x512xi32>
    %c512_i32 = arith.constant 512 : i32
    %6 = arith.muli %arg1, %c512_i32 : i32
    %7 = vector.broadcast %6 : i32 to vector<48x1xi32>
    %8 = arith.subi %4, %7 : vector<48x1xi32>
    %9 = vector.broadcast %8 : vector<48x1xi32> to vector<48x512xi32>
    %10 = arith.cmpi eq, %5, %9 : vector<48x512xi32>
    %cst = arith.constant 0.899999976 : f32
    %cst_4 = arith.constant 2.00400798E-4 : f32
    %11 = vector.broadcast %cst : f32 to vector<48x512xf32>
    %12 = vector.broadcast %cst_4 : f32 to vector<48x512xf32>
    %13 = arith.select %10, %11, %12 : vector<48x512xi1>, vector<48x512xf32>
    %14 = arith.mulf %13, %3 : vector<48x512xf32>
    %c512_i32_5 = arith.constant 512 : i32
    %15 = arith.muli %arg1, %c512_i32_5 : i32
    %c500_i32 = arith.constant 500 : i32
    %16 = arith.subi %c500_i32, %15 : i32
    %17 = vector.broadcast %16 : i32 to vector<48x512xi32>
    %18 = arith.cmpi slt, %5, %17 : vector<48x512xi32>
    %cst_6 = arith.constant 0.000000e+00 : f32
    %19 = vector.broadcast %cst_6 : f32 to vector<48x512xf32>
    %20 = arith.select %18, %14, %19 : vector<48x512xi1>, vector<48x512xf32>
    %c0_7 = arith.constant 0 : index
    %c0_8 = arith.constant 0 : index
    %21 = vector.load %arg5[%c0_7, %c0_8] : memref<48x1xf32, #tpu.memory_space<vmem>>, vector<48x1xf32>
    %cst_9 = arith.constant dense<0.000000e+00> : vector<48xf32>
    %22 = vector.multi_reduction <add>, %20, %cst_9 [1] : vector<48x512xf32> to vector<48xf32>
    %23 = vector.shape_cast %22 : vector<48xf32> to vector<48x1xf32>
    %24 = arith.addf %21, %23 : vector<48x1xf32>
    %c0_10 = arith.constant 0 : index
    %c0_11 = arith.constant 0 : index
    %25 = vector.load %arg5[%c0_10, %c0_11] : memref<48x1xf32, #tpu.memory_space<vmem>>, vector<48x1xf32>
    tpu.vector_store %arg5[%c0_10, %c0_11], %24 {strides = array<i32>} : memref<48x1xf32, #tpu.memory_space<vmem>>, vector<48x1xf32>,
    %c0_i32_12 = arith.constant 0 : i32
    %26 = arith.cmpi eq, %arg1, %c0_i32_12 : i32
    %27 = arith.extui %26 : i1 to i32
    %c0_i32_13 = arith.constant 0 : i32
    %28 = arith.cmpi ne, %27, %c0_i32_13 : i32
    scf.if %28 {
      %c0_14 = arith.constant 0 : index
      %c0_15 = arith.constant 0 : index
      %29 = vector.load %arg5[%c0_14, %c0_15] : memref<48x1xf32, #tpu.memory_space<vmem>>, vector<48x1xf32>
      %cst_16 = arith.constant -0.9463436 : f32
      %30 = vector.broadcast %cst_16 : f32 to vector<48x1xf32>
      %31 = arith.subf %30, %29 : vector<48x1xf32>
      %c0_17 = arith.constant 0 : index
      %c0_18 = arith.constant 0 : index
      %32 = vector.load %arg4[%c0_17, %c0_18] : memref<48x1xf32, #tpu.memory_space<vmem>>, vector<48x1xf32>
      tpu.vector_store %arg4[%c0_17, %c0_18], %31 {strides = array<i32>} : memref<48x1xf32, #tpu.memory_space<vmem>>, vector<48x1xf32>,
    } else {
    }
    return
  }
  func.func @transform_0(%arg0: i32, %arg1: i32) -> (i32, i32) {
    %c0_i32 = arith.constant 0 : i32
    return %arg0, %arg1 : i32, i32
  }
  func.func @transform_1(%arg0: i32, %arg1: i32) -> (i32, i32) {
    %c0_i32 = arith.constant 0 : i32
    %c0_i32_0 = arith.constant 0 : i32
    return %arg0, %c0_i32 : i32, i32
  }
  func.func @transform_2(%arg0: i32, %arg1: i32) -> (i32, i32) {
    %c0_i32 = arith.constant 0 : i32
    %c0_i32_0 = arith.constant 0 : i32
    return %arg0, %c0_i32 : i32, i32
  }
}

</mosaic_0001>

<bundles_post_ra>
// kernel: tpu_custom_call.1
= control target key start
LH: loop header
LB: loop body
LE: loop exit
PB: predicated region body
PF: predicated region fallthrough
CT: control target
= control target key end

     0   :  { %7 = vsyncpa [#allocation6], 0  ;;  %s1434_s0 = inlined_call_operand.hbm [shape: f32[68,500], index: 0, kind: input, shape index: {}]   ;;  %s1435_s1 = inlined_call_operand.vmem [shape: s32[68,1], index: 1, kind: input, shape index: {}]   ;;  %s1436_s2 = inlined_call_operand.vmem [shape: f32[68,1], index: 2, kind: output, shape index: {}]  }
   0x1   :  { %9 = vsyncpa [#allocation6 + $0x1], 0  ;;  %s1074_s9 = smov 0   ;;  %s1076_s10 = smov 0  }
   0x2   :  { %s1078_s11 = smov 0   ;;  %s1080_s12 = smov 0  }
   0x3   :  { %s1082_s13 = smov 0   ;;  %s1084_s14 = smov 0  }
   0x4 LB: > { %s751_s15 = sadd.s32 4294967295, %s1019_s14   ;;  %s27_s16 = sadd.s32 1, %s1015_s13  ;;  %s1019_s14 = sphi %s1084_s14, %s15_s14   ;;  %s1015_s13 = sphi %s1082_s13, %s1446_s13   ;;  %s1011_s12 = sphi %s1080_s12, %s1445_s12   ;;  %s1007_s11 = sphi %s1078_s11, %s1444_s11   ;;  %s1003_s10 = sphi %s1076_s10, %s1443_s10   ;;  %s999_s9 = sphi %s1074_s9, %s1442_s9  }
   0x5   : > { %p29_p0 = scmp.ge.s32.totalorder %s27_s16, 2  ;;  %s36_s17 = sadd.s32 1, %s1007_s11 }
   0x6   : > { %p43_p1 = scmp.ne.s32.totalorder %s1007_s11, %s1003_s10  ;;  %p44_p2 = scmp.eq.s32.totalorder %s1019_s14, 0 }
   0x7   : > { %s1448_s16 = smov (%p29_p0, %s27_s16), 0  ;;  %p49_p4 = scmp.ne.s32.totalorder %s1003_s10, %s999_s9 }
   0x8   : > { %p45_p3 = por %p44_p2, %p43_p1  ;;  %s31_s18 = ssub.s32 %s1015_s13, %s1448_s16 }
   0x9   : > { %p50_p5 = scmp.eq.s32.totalorder %s751_s15, 0  ;;  %p34_p6 = scmp.eq.s32.totalorder %s31_s18, 0 }
   0xa   : > { %p99_p7 = scmp.eq.s32.totalorder %s751_s15, 1  ;;  %p754_p10 = scmp.ge.s32.totalorder %s1019_s14, 2 }
   0xb   : > { %p1113_p8 = por %p50_p5, %p49_p4 }
   0xc   : > { %s1118_s20 = scalar_select %p34_p6, %s1007_s11, %s36_s17  }
   0xd   : > { %p1120_p9 = por %p99_p7, %p43_p1  ;;  %121 = sbr.rel (%p754_p10) target bundleno = 55 (0x37), region = 16 }
  0x14   : > { %124 = sbr.rel (!%p45_p3) target bundleno = 55 (0x37), region = 20  ;;  %s125_s22 = sand.u32 (%p45_p3), 1, %s1007_s11  }
  0x15   : > { %s130_s23 = smul.u32 (%p45_p3), 6, %s1015_s13  ;;  %s1130_s28 = scalar_lea.sflag (%p45_p3), [#allocation6], %s125_s22 }
  0x16   : > { %s781_s24 = smul.u32 (%p45_p3), 192, %s125_s22 }
  0x17   : > { %s132_s25 = ssub.s32 (%p45_p3), 9, %s130_s23 }
  0x18   : > { %p133_p11 = scmp.lt.s32.totalorder (%p45_p3), %s132_s25, 6  ;;  %s129_s29 = scalar_lea.vmem (%p45_p3), [#allocation5], %s781_s24 }
  0x1b   : > { %s1450_s25 = smov (!%p133_p11, %s132_s25), 6 }
  0x1c   : > { %s1127_s26 = sshll.u32 %s1450_s25, 9 }
  0x1d   : > { %s138_s27 = ssub.s32 3072, %s1127_s26 }
  0x1e   : > { %139 = vsyncadd %s1130_s28, %s138_s27  ;;  %p757_p12 = scmp.ne.s32.totalorder %s1127_s26, 0  ;;  %s780_s30 = smul.u32 3072, %s1015_s13 }
  0x1f   : > { %s146_s3 = sshll.u32 %s129_s29, 4  ;;  %s913_s15 = scalar_lea.hbm %s1434_s0, 4608  ;;  %s1140_s3 = int_to_ptr.vmem [resolvable:$true] %s146_s3 }
  0x20   : > { %s1138_s6 = scalar_lea.hbm %s1434_s0, %s780_s30 }
  0x21   : > { %s909_s7 = scalar_lea.hbm %s1138_s6, %s1127_s26  ;;  %p914_p2 = scmp.lt.u32.totalorder %s1138_s6, %s1434_s0 }
  0x22   : > { %p910_p13 = scmp.ne.s32.totalorder %s1138_s6, %s909_s7  ;;  %p915_p3 = scmp.lt.u32.totalorder %s913_s15, %s909_s7 }
  0x23   : > { %p917_p5 = scmp.lt.u32.totalorder %s909_s7, %s1138_s6 }
  0x24   : > { %p911_p0 = pnand %p910_p13, %p757_p12  ;;  %p916_p4 = por %p915_p3, %p914_p2 }
  0x26   : > { %p912_p1 = pneg %p911_p0  ;;  %p918_p6 = por %p917_p5, %p916_p4 }
  0x28   : > { %p919_p7 = pnand %p918_p6, %p912_p1 }
  0x2a   : > { %922 = shalt.err (!%p919_p7)
}
  0x2b   : > { %s923_s22 = scalar_lea.vmem %s1140_s3, %s1127_s26  ;;  %s1053_s23 = smov [#allocation5]  }
  0x2c   : > { %p924_p10 = scmp.ne.s32.totalorder %s1140_s3, %s923_s22  ;;  %s927_s24 = sshll.u32 %s1053_s23, 4  ;;  %s928_s24 = int_to_ptr.vmem [resolvable:$false] %s927_s24 }
  0x2d   : > { %s929_s25 = scalar_lea.vmem %s928_s24, 6144  ;;  %p930_p0 = scmp.lt.s32.totalorder %s1140_s3, %s928_s24 }
  0x2e   : > { %p925_p11 = pnand %p924_p10, %p757_p12  ;;  %p931_p2 = scmp.lt.s32.totalorder %s929_s25, %s923_s22 }
  0x30   : > { %p926_p13 = pneg %p925_p11  ;;  %p932_p3 = por %p931_p2, %p930_p0 }
  0x32   : > { %p933_p4 = pnand %p932_p3, %p926_p13 }
  0x34   : > { %936 = shalt.err (!%p933_p4)
}
  0x35   : > { %s1054_s27 = smov 512   ;;  %s1055_s29 = smov 32  }
  0x36   : > { %152 = dma.hbm_to_vmem [thread:$0]  (%p757_p12), %s1138_s6, %s1127_s26, %s1140_s3, %s1130_s28, %s1054_s27, %s1054_s27, %s1055_s29  }
  0x37 PF: > { %p762_p1 = scmp.ge.s32.totalorder %s1019_s14, 1  ;;  %p171_p5 = scmp.lt.s32.totalorder %s1019_s14, 3 }
  0x39   : > { %p172_p6 = pnand %p762_p1, %p171_p5 }
  0x3a   : > { %s1170_s30 = sand.u32 (!%p172_p6), 1, %s1003_s10  }
  0x3b   : > { %175 = sbr.rel (%p172_p6) target bundleno = 451 (0x1c3), region = 28  ;;  %s178_s5 = scalar_lea.sflag (!%p172_p6), [#allocation6], %s1170_s30 }
  0x3c   : > { %s782_s4 = smul.u32 (!%p172_p6), 192, %s1170_s30 }
  0x3e   : > { %s1174_s7 = scalar_lea.vmem (!%p172_p6), [#allocation5], %s782_s4 }
  0x42   : > { %994 = dma.done.wait (%p1113_p8), %s178_s5, 3072  }
  0x43   : > { %996 = vsyncadd (%p1113_p8), %s178_s5, 4294964224  ;;  %s1181_s26 = smul.u32 6, %s1011_s12  ;;  %v1056_v0 = vmov 0   ;;  %vm240_vm0 = vcmask 7168   ;;  %v1057_v7 = vmov 0.0   ;;  %v277_v8 = vlaneseq  ;;  %v247_v15 = vld [vmem:[%s1174_s7] sm:$0xff] }
  0x44   : > { %904 = vset.pattern.permute.xlu1 %v1056_v0  ;;  %903 = vset.pattern.permute.xlu0 %v1056_v0  ;;  %241 = vst.msk [vmem:[#allocation2] sm:$0xff] %vm240_vm0, %v1057_v7  ;;  %242 = vst.msk [vmem:[#allocation2 + $0x8] sm:$0xff] %vm240_vm0, %v1057_v7  ;;  %v248_v16 = vld [vmem:[%s1174_s7 + $0x8] sm:$0xff]  ;;  %v1058_v17 = vmov 0.0002004008   ;;  %v250_v25 = vld [vmem:[%s1174_s7 + $0x18] sm:$0xff] }
  0x45   : > { %p222_p12 = scmp.lt.s32.totalorder %s1181_s26, 8  ;;  %243 = vst.msk [vmem:[#allocation2 + $0x10] sm:$0xff] %vm240_vm0, %v1057_v7  ;;  %244 = vst.msk [vmem:[#allocation2 + $0x18] sm:$0xff] %vm240_vm0, %v1057_v7  ;;  %v1194_v9 = vand.u32 127, %v277_v8  ;;  %v249_v28 = vld [vmem:[%s1174_s7 + $0x10] sm:$0xff]  ;;  %v251_v39 = vld [vmem:[%s1174_s7 + $0x20] sm:$0xff] }
  0x46   : > { %245 = vst.msk [vmem:[#allocation2 + $0x20] sm:$0xff] %vm240_vm0, %v1057_v7  ;;  %246 = vst.msk [vmem:[#allocation2 + $0x28] sm:$0xff] %vm240_vm0, %v1057_v7  ;;  %v252_v40 = vld [vmem:[%s1174_s7 + $0x28] sm:$0xff]  ;;  %v253_v44 = vld [vmem:[%s1174_s7 + $0x30] sm:$0xff]  ;;  %s783_s19 = smul.u32 48, %s1170_s30  ;;  %s488_s17 = ssub.s32 (%p1120_p9), 9, %s1181_s26 }
  0x47   : > { %s223_s28 = scalar_select %p222_p12, %s1181_s26, 8  ;;  %v1197_v10 = vadd.s32 128, %v1194_v9  ;;  %v1200_v11 = vadd.s32 256, %v1194_v9  ;;  %v1203_v12 = vadd.s32 384, %v1194_v9  ;;  %v254_v45 = vld [vmem:[%s1174_s7 + $0x38] sm:$0xff]  ;;  %v255_v48 = vld [vmem:[%s1174_s7 + $0x40] sm:$0xff] }
  0x48   : > { %v256_v49 = vld [vmem:[%s1174_s7 + $0x48] sm:$0xff]  ;;  %v257_v54 = vld [vmem:[%s1174_s7 + $0x50] sm:$0xff]  ;;  %v258_v55 = vld [vmem:[%s1174_s7 + $0x58] sm:$0xff]  ;;  %s1354_s15 = scalar_lea.vmem [#allocation7], %s783_s19   ;;  %s779_s18 = smul.u32 (%p1120_p9), 48, %s1011_s12 }
  0x49   : > { %s763_s3 = sshll.u32 %s223_s28, 3  ;;  %vm385_vm1 = vcmp.lt.s32.totalorder %v1203_v12, 500  ;;  %v263_v60 = vld [vmem:[%s1174_s7 + $0x80] sm:$0xff]  ;;  %v266_v7 = vld [vmem:[%s1174_s7 + $0x98] sm:$0xff]  ;;  %p489_p8 = scmp.lt.s32.totalorder (%p1120_p9), %s488_s17, 6 }
  0x4a   : > { %s225_s9 = scalar_lea.vmem %s1435_s1, %s763_s3  ;;  %s1377_s24 = scalar_lea.vmem (%p1120_p9), %s1436_s2, %s779_s18  }
  0x4b   : > { %v273_v1 = vld [vmem:[%s225_s9 + $0x10] sm:$0xff]  ;;  %v271_v2 = vld [vmem:[%s225_s9] sm:$0xff]  ;;  %v274_v3 = vld [vmem:[%s225_s9 + $0x18] sm:$0xff] }
  0x4c   : > { %297 = vperm.xlu1 %904, %v273_v1   ;;  %291 = vperm.xlu0 %903, %v271_v2   ;;  %v272_v4 = vld [vmem:[%s225_s9 + $0x8] sm:$0xff]  ;;  %v275_v6 = vld [vmem:[%s225_s9 + $0x20] sm:$0xff]  ;;  %v264_v1 = vld [vmem:[%s1174_s7 + $0x88] sm:$0xff] }
  0x4d   : > { %v276_v5 = vld [vmem:[%s225_s9 + $0x28] sm:$0xff]  ;;  %v265_v2 = vld [vmem:[%s1174_s7 + $0x90] sm:$0xff] }
  0x50   : > { %300 = vperm.xlu1 %904, %v274_v3   ;;  %294 = vperm.xlu0 %903, %v272_v4  }
  0x54   : > { %306 = vperm.xlu1 %904, %v276_v5   ;;  %303 = vperm.xlu0 %903, %v275_v6  }
  0xcb   : > { %v1205_v13 = vpop.permute.xlu1 %297  ;;  %v292_v14 = vpop.permute.xlu0 %291 }
  0xcc   : > { %vm316_vm2 = vcmp.eq.s32.totalorder %v1194_v9, %v1205_v13  ;;  %vm317_vm3 = vcmp.eq.s32.totalorder %v1197_v10, %v1205_v13  ;;  %vm308_vm4 = vcmp.eq.s32.totalorder %v1194_v9, %v292_v14  ;;  %vm309_vm5 = vcmp.eq.s32.totalorder %v1197_v10, %v292_v14 }
  0xcd   : > { %vm310_vm6 = vcmp.eq.s32.totalorder %v1200_v11, %v292_v14  ;;  %vm311_vm7 = vcmp.eq.s32.totalorder %v1203_v12, %v292_v14  ;;  %v332_v18 = vsel %vm308_vm4, 0.9, %v1058_v17  ;;  %v333_v19 = vsel %vm309_vm5, 0.9, %v1058_v17  ;;  %v259_v14 = vld [vmem:[%s1174_s7 + $0x60] sm:$0xff] }
  0xce   : > { %vm318_vm8 = vcmp.eq.s32.totalorder %v1200_v11, %v1205_v13  ;;  %vm319_vm9 = vcmp.eq.s32.totalorder %v1203_v12, %v1205_v13  ;;  %v356_v22 = vmul.f32 %v332_v18, %v247_v15  ;;  %v357_v23 = vmul.f32 %v333_v19, %v248_v16  ;;  %v260_v15 = vld [vmem:[%s1174_s7 + $0x68] sm:$0xff] }
  0xcf   : > { %v1224_v20 = vpop.permute.xlu1 %300  ;;  %v295_v21 = vpop.permute.xlu0 %294  ;;  %v340_v24 = vsel %vm316_vm2, 0.9, %v1058_v17  ;;  %v335_v26 = vsel %vm311_vm7, 0.9, %v1058_v17  ;;  %v341_v27 = vsel %vm317_vm3, 0.9, %v1058_v17 }
  0xd0   : > { %vm320_vm10 = vcmp.eq.s32.totalorder %v1194_v9, %v1224_v20  ;;  %vm321_vm11 = vcmp.eq.s32.totalorder %v1197_v10, %v1224_v20  ;;  %vm312_vm12 = vcmp.eq.s32.totalorder %v1194_v9, %v295_v21  ;;  %vm313_vm13 = vcmp.eq.s32.totalorder %v1197_v10, %v295_v21 }
  0xd1   : > { %v334_v29 = vsel %vm310_vm6, 0.9, %v1058_v17  ;;  %vm322_vm14 = vcmp.eq.s32.totalorder %v1200_v11, %v1224_v20  ;;  %vm323_vm15 = vcmp.eq.s32.totalorder %v1203_v12, %v1224_v20  ;;  %v1248_v30 = vsel %vm320_vm10, 0.9, %v1058_v17 }
  0xd2   : > { %v1251_v31 = vsel %vm321_vm11, 0.9, %v1058_v17  ;;  %vm314_vm2 = vcmp.eq.s32.totalorder %v1200_v11, %v295_v21  ;;  %vm315_vm3 = vcmp.eq.s32.totalorder %v1203_v12, %v295_v21  ;;  %v336_v32 = vsel %vm312_vm12, 0.9, %v1058_v17 }
  0xd3   : > { %v337_v33 = vsel %vm313_vm13, 0.9, %v1058_v17  ;;  %v1257_v34 = vpop.permute.xlu1 %306  ;;  %v304_v35 = vpop.permute.xlu0 %303  ;;  %v359_v36 = vmul.f32 %v335_v26, %v250_v25  ;;  %v416_v37 = vadd.f32 %v357_v23, %v356_v22  ;;  %v358_v38 = vmul.f32 %v334_v29, %v249_v28  ;;  %v261_v22 = vld [vmem:[%s1174_s7 + $0x70] sm:$0xff]  ;;  %v262_v23 = vld [vmem:[%s1174_s7 + $0x78] sm:$0xff] }
  0xd4   : > { %vm328_vm4 = vcmp.eq.s32.totalorder %v1194_v9, %v1257_v34  ;;  %vm329_vm5 = vcmp.eq.s32.totalorder %v1197_v10, %v1257_v34  ;;  %v338_v41 = vsel %vm314_vm2, 0.9, %v1058_v17  ;;  %vm330_vm6 = vcmp.eq.s32.totalorder %v1200_v11, %v1257_v34 }
  0xd5   : > { %vm331_vm7 = vcmp.eq.s32.totalorder %v1203_v12, %v1257_v34  ;;  %v1271_v42 = vsel %vm328_vm4, 0.9, %v1058_v17  ;;  %v1274_v43 = vsel %vm329_vm5, 0.9, %v1058_v17  ;;  %vm324_vm10 = vcmp.eq.s32.totalorder %v1194_v9, %v304_v35 }
  0xd6   : > { %vm325_vm11 = vcmp.eq.s32.totalorder %v1197_v10, %v304_v35  ;;  %vm326_vm12 = vcmp.eq.s32.totalorder %v1200_v11, %v304_v35  ;;  %vm327_vm13 = vcmp.eq.s32.totalorder %v1203_v12, %v304_v35  ;;  %v348_v46 = vsel %vm324_vm10, 0.9, %v1058_v17  ;;  %v267_v35 = vld [vmem:[%s1174_s7 + $0xa0] sm:$0xff] }
  0xd7   : > { %v349_v47 = vsel %vm325_vm11, 0.9, %v1058_v17  ;;  %v389_v50 = vsel %vm385_vm1, %v359_v36, 0.0  ;;  %v417_v51 = vadd.f32 %v416_v37, %v358_v38  ;;  %v339_v52 = vsel %vm315_vm3, 0.9, %v1058_v17  ;;  %v268_v36 = vld [vmem:[%s1174_s7 + $0xa8] sm:$0xff] }
  0xd8   : > { %v360_v53 = vmul.f32 %v336_v32, %v251_v39  ;;  %v361_v56 = vmul.f32 %v337_v33, %v252_v40  ;;  %v362_v57 = vmul.f32 %v338_v41, %v253_v44  ;;  %v363_v58 = vmul.f32 %v339_v52, %v254_v45  ;;  %v269_v44 = vld [vmem:[%s1174_s7 + $0xb0] sm:$0xff]  ;;  %v270_v45 = vld [vmem:[%s1174_s7 + $0xb8] sm:$0xff] }
  0xd9   : > { %v342_v59 = vsel %vm318_vm8, 0.9, %v1058_v17  ;;  %v418_v61 = vadd.f32 %v417_v51, %v389_v50  ;;  %v343_v62 = vsel %vm319_vm9, 0.9, %v1058_v17  ;;  %v364_v63 = vmul.f32 %v340_v24, %v255_v48 }
  0xda   : > { %v365_v0 = vmul.f32 %v341_v27, %v256_v49  ;;  %v393_v3 = vsel %vm385_vm1, %v363_v58, 0.0  ;;  %v421_v4 = vadd.f32 %v361_v56, %v360_v53  ;;  %v366_v5 = vmul.f32 %v342_v59, %v257_v54  ;;  %v411_v56 = vld [vmem:[#allocation2 + $0x8] sm:$0xff] }
  0xdb   : > { %v367_v6 = vmul.f32 %v343_v62, %v258_v55  ;;  %419 = vadd.xlane.f32.xlu0 %v418_v61  ;;  %v350_v9 = vsel %vm326_vm12, 0.9, %v1058_v17  ;;  %v351_v10 = vsel %vm327_vm13, 0.9, %v1058_v17  ;;  %v372_v13 = vmul.f32 %v348_v46, %v263_v60  ;;  %v414_v62 = vld [vmem:[#allocation2 + $0x20] sm:$0xff] }
  0xdc   : > { %v426_v8 = vadd.f32 %v365_v0, %v364_v63  ;;  %v422_v16 = vadd.f32 %v421_v4, %v362_v57  ;;  %v373_v19 = vmul.f32 %v349_v47, %v264_v1  ;;  %v374_v21 = vmul.f32 %v350_v9, %v265_v2  ;;  %v412_v57 = vld [vmem:[#allocation2 + $0x10] sm:$0xff]  ;;  %v413_v63 = vld [vmem:[#allocation2 + $0x18] sm:$0xff] }
  0xdd   : > { %v397_v18 = vsel %vm385_vm1, %v367_v6, 0.0  ;;  %v375_v25 = vmul.f32 %v351_v10, %v266_v7  ;;  %v346_v26 = vsel %vm322_vm14, 0.9, %v1058_v17  ;;  %v347_v27 = vsel %vm323_vm15, 0.9, %v1058_v17 }
  0xde   : > { %v427_v24 = vadd.f32 %v426_v8, %v366_v5  ;;  %v423_v28 = vadd.f32 %v422_v16, %v393_v3  ;;  %v436_v29 = vadd.f32 %v373_v19, %v372_v13  ;;  %v368_v32 = vmul.f32 %v1248_v30, %v259_v14  ;;  %v415_v5 = vld [vmem:[#allocation2 + $0x28] sm:$0xff] }
  0xdf   : > { %v369_v33 = vmul.f32 %v1251_v31, %v260_v15  ;;  %v370_v38 = vmul.f32 %v346_v26, %v261_v22  ;;  %v371_v39 = vmul.f32 %v347_v27, %v262_v23  ;;  %v354_v20 = vsel %vm330_vm6, 0.9, %v1058_v17 }
  0xe0   : > { %v428_v37 = vadd.f32 %v427_v24, %v397_v18  ;;  %424 = vadd.xlane.f32.xlu1 %v423_v28  ;;  %v437_v40 = vadd.f32 %v436_v29, %v374_v21  ;;  %v355_v30 = vsel %vm331_vm7, 0.9, %v1058_v17  ;;  %v405_v31 = vsel %vm385_vm1, %v375_v25, 0.0 }
  0xe1   : > { %v431_v41 = vadd.f32 %v369_v33, %v368_v32  ;;  %v376_v46 = vmul.f32 %v1271_v42, %v267_v35  ;;  %v377_v47 = vmul.f32 %v1274_v43, %v268_v36  ;;  %v401_v50 = vsel %vm385_vm1, %v371_v39, 0.0  ;;  %v410_v42 = vld [vmem:[#allocation2] sm:$0xff] }
  0xe2   : > { %429 = vadd.xlane.f32.xlu0 %v428_v37  ;;  %v438_v48 = vadd.f32 %v437_v40, %v405_v31  ;;  %v378_v11 = vmul.f32 %v354_v20, %v269_v44  ;;  %v379_v51 = vmul.f32 %v355_v30, %v270_v45 }
  0xe3   : > { %v432_v49 = vadd.f32 %v431_v41, %v370_v38  ;;  %v441_v52 = vadd.f32 %v377_v47, %v376_v46 }
  0xe4   : > { %439 = vadd.xlane.f32.xlu1 %v438_v48  ;;  %v409_v53 = vsel %vm385_vm1, %v379_v51, 0.0 }
  0xe5   : > { %v433_v34 = vadd.f32 %v432_v49, %v401_v50  ;;  %v442_v17 = vadd.f32 %v441_v52, %v378_v11 }
  0xe7   : > { %434 = vadd.xlane.f32.xlu0 %v433_v34  ;;  %v443_v54 = vadd.f32 %v442_v17, %v409_v53 }
  0xeb   : > { %444 = vadd.xlane.f32.xlu0 %v443_v54 }
 0x168   : > { %v420_v43 = vpop.xlane.xlu0 %419 }
 0x169   : > { %v446_v55 = vadd.f32 %v420_v43, %v410_v42 }
 0x16b   : > { %453 = vst.msk [vmem:[#allocation2] sm:$0xff] %vm240_vm0, %v446_v55 }
 0x16d   : > { %v425_v58 = vpop.xlane.xlu1 %424 }
 0x16e   : > { %v447_v59 = vadd.f32 %v425_v58, %v411_v56 }
 0x16f   : > { %v430_v60 = vpop.xlane.xlu0 %429 }
 0x170   : > { %v448_v61 = vadd.f32 %v430_v60, %v412_v57  ;;  %454 = vst.msk [vmem:[#allocation2 + $0x8] sm:$0xff] %vm240_vm0, %v447_v59 }
 0x171   : > { %v440_v12 = vpop.xlane.xlu1 %439 }
 0x172   : > { %455 = vst.msk [vmem:[#allocation2 + $0x10] sm:$0xff] %vm240_vm0, %v448_v61  ;;  %v462_v0 = vld [vmem:[#allocation2] sm:$0xff]  ;;  %v450_v1 = vadd.f32 %v440_v12, %v414_v62 }
 0x173   : > { %v468_v2 = vsub.f32 -0.9463436, %v462_v0 }
 0x174   : > { %v435_v3 = vpop.xlane.xlu0 %434  ;;  %457 = vst.msk [vmem:[#allocation2 + $0x20] sm:$0xff] %vm240_vm0, %v450_v1 }
 0x175   : > { %v449_v4 = vadd.f32 %v435_v3, %v413_v63  ;;  %474 = vst.msk [vmem:[%s1354_s15] sm:$0xff] %vm240_vm0, %v468_v2 }
 0x177   : > { %456 = vst.msk [vmem:[#allocation2 + $0x18] sm:$0xff] %vm240_vm0, %v449_v4  ;;  %v463_v6 = vld [vmem:[#allocation2 + $0x8] sm:$0xff] }
 0x178   : > { %v445_v7 = vpop.xlane.xlu0 %444  ;;  %v469_v8 = vsub.f32 -0.9463436, %v463_v6 }
 0x179   : > { %v464_v9 = vld [vmem:[#allocation2 + $0x10] sm:$0xff]  ;;  %v451_v10 = vadd.f32 %v445_v7, %v415_v5 }
 0x17a   : > { %v470_v13 = vsub.f32 -0.9463436, %v464_v9  ;;  %475 = vst.msk [vmem:[%s1354_s15 + $0x8] sm:$0xff] %vm240_vm0, %v469_v8 }
 0x17b   : > { %458 = vst.msk [vmem:[#allocation2 + $0x28] sm:$0xff] %vm240_vm0, %v451_v10  ;;  %v466_v14 = vld [vmem:[#allocation2 + $0x20] sm:$0xff] }
 0x17c   : > { %476 = vst.msk [vmem:[%s1354_s15 + $0x10] sm:$0xff] %vm240_vm0, %v470_v13  ;;  %v472_v15 = vsub.f32 -0.9463436, %v466_v14 }
 0x17e   : > { %v465_v16 = vld [vmem:[#allocation2 + $0x18] sm:$0xff]  ;;  %478 = vst.msk [vmem:[%s1354_s15 + $0x20] sm:$0xff] %vm240_vm0, %v472_v15 }
 0x17f   : > { %v471_v18 = vsub.f32 -0.9463436, %v465_v16  ;;  %486 = sbr.rel (!%p1120_p9) target bundleno = 451 (0x1c3), region = 44 }
 0x181   : > { %477 = vst.msk [vmem:[%s1354_s15 + $0x18] sm:$0xff] %vm240_vm0, %v471_v18 }
 0x182   : > { %v467_v19 = vld [vmem:[#allocation2 + $0x28] sm:$0xff] }
 0x183   : > { %v473_v21 = vsub.f32 -0.9463436, %v467_v19 }
 0x185   : > { %479 = vst.msk [vmem:[%s1354_s15 + $0x28] sm:$0xff] %vm240_vm0, %v473_v21 }
 0x186   : > { %s1452_s17 = smov (!%p489_p8, %s488_s17), 6 }
 0x187   : > { %s764_s25 = sshll.u32 %s1452_s17, 7 }
 0x188   : > { %p767_p7 = scmp.eq.s32.totalorder %s764_s25, 0 }
 0x189   : > { %905 = sdivrem.u32 (!%p767_p7), %s1452_s17, 6 }
 0x18a   : > { %497 = sbr.rel (%p767_p7) target bundleno = 451 (0x1c3), region = 48 }
 0x192   : > { %s1383_s21 = spop.drf %905 }
 0x193   : > { %p768_p9 = scmp.le.s32.totalorder %s1383_s21, 0 }
 0x194   : > { %s1439_s12 = smov (!%p768_p9), %s1377_s24  ;;  %s1440_s27 = smov (!%p768_p9), %s1354_s15 }
 0x195   : > { %690 = sbr.rel (%p768_p9) target bundleno = 422 (0x1a6), region = 133  ;;  %s1392_s29 = smov (!%p768_p9), 0  }
 0x196   : > { %s1394_s30 = smov (!%p768_p9), 0  }
 0x19c LB: >> { %v571_v22 = vld [vmem:[%s1027_s27] sm:$0xff]  ;;  %v573_v23 = vld [vmem:[%s1027_s27 + $0x8] sm:$0xff]  ;;  %v575_v24 = vld [vmem:[%s1027_s27 + $0x10] sm:$0xff]  ;;  %s583_s4 = sadd.s32 1, %s1031_s29  ;;  %s565_s30 = sadd.s32 1, %s1035_s30   ;;  %s1035_s30 = sphi %s1394_s30, %s565_s30   ;;  %s1031_s29 = sphi %s1392_s29, %s1441_s29   ;;  %s1027_s27 = sphi %s1440_s27, %s588_s27   ;;  %s1023_s12 = sphi %s1439_s12, %s589_s12  }
 0x19d   : >> { %572 = vst [vmem:[%s1023_s12] sm:$0xff] %v571_v22  ;;  %574 = vst [vmem:[%s1023_s12 + $0x8] sm:$0xff] %v573_v23  ;;  %v577_v25 = vld [vmem:[%s1027_s27 + $0x18] sm:$0xff]  ;;  %v579_v26 = vld [vmem:[%s1027_s27 + $0x20] sm:$0xff]  ;;  %p584_p10 = scmp.ge.s32.totalorder %s583_s4, %s1383_s21  ;;  %p564_p11 = scmp.ge.s32.totalorder %s565_s30, %s1383_s21 }
 0x19e   : >> { %576 = vst [vmem:[%s1023_s12 + $0x10] sm:$0xff] %v575_v24  ;;  %v581_v27 = vld [vmem:[%s1027_s27 + $0x28] sm:$0xff]  ;;  %578 = vst [vmem:[%s1023_s12 + $0x18] sm:$0xff] %v577_v25 }
 0x19f   : >> { %580 = vst [vmem:[%s1023_s12 + $0x20] sm:$0xff] %v579_v26  ;;  %582 = vst [vmem:[%s1023_s12 + $0x28] sm:$0xff] %v581_v27  ;;  %s1454_s4 = smov (%p584_p10, %s583_s4), 0  ;;  %567 = sbr.rel (!%p564_p11) target bundleno = 412 (0x19c), region = 139 }
 0x1a0   : >> { %s586_s5 = smul.u32 48, %s1454_s4  ;;  %s1441_s29 = smov %s1454_s4 }
 0x1a2   : >> { %s588_s27 = scalar_lea.vmem %s1354_s15, %s586_s5 [#allocation7]   ;;  %s589_s12 = scalar_lea.vmem %s1377_s24, %s586_s5  }
 0x1a6 PF: > { %907 = sdivrem.u32 %s1452_s17, 6 }
 0x1a7   : > { %s769_s7 = smul.u32 48, %s1383_s21 }
 0x1a9   : > { %s594_s26 = scalar_lea.vmem %s1354_s15, %s769_s7 [#allocation7]   ;;  %s596_s28 = scalar_lea.vmem %s1377_s24, %s769_s7  }
 0x1af   : > { %s908_s3 = spop.drf %907 }
 0x1b0   : > { %p771_p13 = scmp.le.s32.totalorder %s908_s3, 0 }
 0x1b1   : > { %s1037_s6 = smov (!%p771_p13), %s596_s28   ;;  %s1041_s8 = smov (!%p771_p13), %s594_s26  }
 0x1b2   : > { %704 = sbr.rel (%p771_p13) target bundleno = 451 (0x1c3), region = 144  ;;  %s1045_s9 = smov (!%p771_p13), 0  }
 0x1b3   : > { %s1049_s19 = smov (!%p771_p13), 0  }
 0x1b9 LB: >> { %v606_v28 = vld [vmem:[%s1043_s8] sm:$0xff]  ;;  %s608_s18 = sadd.s32 1, %s1047_s9  ;;  %s600_s19 = sadd.s32 1, %s1051_s19   ;;  %s1051_s19 = sphi %s1049_s19, %s600_s19   ;;  %s1047_s9 = sphi %s1045_s9, %s1046_s9   ;;  %s1043_s8 = sphi %s1041_s8, %s613_s8   ;;  %s1039_s6 = sphi %s1037_s6, %s614_s6  }
 0x1ba   : >> { %607 = vst [vmem:[%s1039_s6] sm:$0xff] %v606_v28  ;;  %p609_p0 = scmp.ge.s32.totalorder %s608_s18, %s908_s3  ;;  %p599_p2 = scmp.ge.s32.totalorder %s600_s19, %s908_s3 }
 0x1bc   : >> { %s1456_s18 = smov (%p609_p0, %s608_s18), 0  ;;  %602 = sbr.rel (!%p599_p2) target bundleno = 441 (0x1b9), region = 150 }
 0x1bd   : >> { %s772_s15 = sshll.u32 %s1456_s18, 3  ;;  %s1046_s9 = smov %s1456_s18  }
 0x1be   : >> { %s613_s8 = scalar_lea.vmem %s594_s26, %s772_s15 [#allocation7]   ;;  %s614_s6 = scalar_lea.vmem %s596_s28, %s772_s15  }
 0x1c3 PF: > { %s15_s14 = sadd.s32 1, %s1019_s14   ;;  %s1442_s9 = smov %s1003_s10 }
 0x1c4   : > { %p12_p3 = scmp.ge.s32.totalorder %s15_s14, 4   ;;  %s1443_s10 = smov %s1007_s11 }
 0x1c5   : > { %s1444_s11 = smov %s1118_s20  ;;  %s1445_s12 = smov %s1015_s13 }
 0x1c6   : > { %s1446_s13 = smov %s1448_s16  ;;  %14 = sbr.rel (!%p12_p3) target bundleno = 4 (0x4), region = 161 }
 0x1cd   :  { %630 = vsyncpa [#allocation6], 1 }
 0x1ce   :  { %632 = vsyncpa [#allocation6 + $0x1], 1 }

</bundles_post_ra>
